<compile_context>
chip_gen: v5e
topology: v5e:2x2
jax: 0.10.0
libtpu: 0.0.40
codegen_flags: <defaults>
</compile_context>

<pallas_src>
import jax
import jax.numpy as jnp
from jax.experimental import pallas as pl
from jax.experimental.pallas import tpu as pltpu


# ---------------------------------------------------------------------------
# Kernel 1: attention + 2-layer GRU (single decode step, single block)
# ---------------------------------------------------------------------------
def _gru_gates(gi, gh, h_prev, H):
    """PyTorch nn.GRU gate math; gate order (r, z, n).

    NOTE: at production sizes H is a multiple of 128, so these lane slices of
    the fused [B, 3H] pre-activations are tile-aligned (no relayout)."""
    r = jax.nn.sigmoid(gi[:, 0 * H:1 * H] + gh[:, 0 * H:1 * H])
    z = jax.nn.sigmoid(gi[:, 1 * H:2 * H] + gh[:, 1 * H:2 * H])
    n = jnp.tanh(gi[:, 2 * H:3 * H] + r * gh[:, 2 * H:3 * H])
    return (1.0 - z) * n + z * h_prev


def attn_gru_kernel(emb_ref, hid_ref, encb_ref,
                    wa_h_ref, wa_e_ref, attn_b_ref, v_ref,
                    wih0e_ref, wih0c_ref, whh0_ref, bih0_ref, bhh0_ref,
                    wih1_ref, whh1_ref, bih1_ref, bhh1_ref,
                    newhid_ref, ctx_ref, attnw_ref):
    wdt = wa_h_ref.dtype                        # weight streaming dtype (bf16 default)
    emb = emb_ref[...]                          # [B, E] f32
    enc = encb_ref[...]                         # [B, S, H] f32 (batch-major)
    B, S, H = enc.shape
    h_top = hid_ref[1]                          # old top-layer hidden, [B, H]

    # --- Attention: energy = tanh(h @ Wa_h + enc @ Wa_e + b); score = energy.v
    h_part = jnp.dot(h_top.astype(wdt), wa_h_ref[...],
                     preferred_element_type=jnp.float32)              # [B, H]
    e_part = jnp.dot(enc.reshape(B * S, H).astype(wdt), wa_e_ref[...],
                     preferred_element_type=jnp.float32).reshape(B, S, H)
    energy = jnp.tanh(h_part[:, None, :] + e_part
                      + attn_b_ref[...][None, :, :])                  # [B, S, H]
    # Score contraction kept as VPU multiply + lane reduce for robust lowering
    # at small H; for H >= 128 route it to the MXU (reshape(B*S,H) @ v_col).
    scores = jnp.sum(energy * v_ref[...][None, :, :], axis=-1)        # [B, S]

    # softmax over the sequence axis (lane axis in batch-major layout)
    m = jnp.max(scores, axis=1, keepdims=True)
    ex = jnp.exp(scores - m)
    attn = ex / jnp.sum(ex, axis=1, keepdims=True)                    # [B, S]
    attnw_ref[...] = attn                                             # no transpose

    # context[b, h] = sum_s attn[b, s] * enc[b, s, h]
    context = jnp.sum(attn[:, :, None] * enc, axis=1)                 # [B, H] f32
    ctx_ref[...] = context

    # --- 2-layer GRU, single time step. Input concat [emb, context] is
    # replaced by split, pre-transposed weights (accumulating dots).
    h0_prev = hid_ref[0]
    h1_prev = hid_ref[1]

    gi0 = (jnp.dot(emb.astype(wdt), wih0e_ref[...],
                   preferred_element_type=jnp.float32)
           + jnp.dot(context.astype(wdt), wih0c_ref[...],
                     preferred_element_type=jnp.float32)
           + bih0_ref[...])
    gh0 = jnp.dot(h0_prev.astype(wdt), whh0_ref[...],
                  preferred_element_type=jnp.float32) + bhh0_ref[...]
    h0 = _gru_gates(gi0, gh0, h0_prev, H)

    gi1 = jnp.dot(h0.astype(wdt), wih1_ref[...],
                  preferred_element_type=jnp.float32) + bih1_ref[...]
    gh1 = jnp.dot(h1_prev.astype(wdt), whh1_ref[...],
                  preferred_element_type=jnp.float32) + bhh1_ref[...]
    h1 = _gru_gates(gi1, gh1, h1_prev, H)

    newhid_ref[0] = h0
    newhid_ref[1] = h1


# ---------------------------------------------------------------------------
# Kernel 2: fused vocab projection, tiled/pipelined over the vocab axis
#   logits[:, tile] = [emb, h1, ctx] @ w_out_T[:, tile] + b[tile]
# ---------------------------------------------------------------------------
def vocab_proj_kernel(x_ref, w_ref, b_ref, out_ref):
    out_ref[...] = (jnp.dot(x_ref[...].astype(w_ref.dtype), w_ref[...],
                            preferred_element_type=jnp.float32)
                    + b_ref[...])              # raw logits; log_softmax in wrapper


# ---------------------------------------------------------------------------
# One-time prep (per model / per source sequence — NOT per decode step)
# ---------------------------------------------------------------------------
def prepare_params(params, *, rnn_weight_dtype=jnp.bfloat16,
                   proj_weight_dtype=jnp.bfloat16):
    """Pre-transpose / pre-split / pre-cast all weights once."""
    H = params["attn_w"].shape[0]
    E = params["embedding"].shape[1]
    attn_w = params["attn_w"]                  # [H, 2H]
    wih0_T = params["w_ih_l0"].T               # [E+H, 3H]
    return {
        "embedding": params["embedding"],
        # attention
        "wa_h":   attn_w[:, :H].T.astype(rnn_weight_dtype),   # [H, H]
        "wa_e":   attn_w[:, H:].T.astype(rnn_weight_dtype),   # [H, H]
        "attn_b": params["attn_b"],                            # [1, H] f32
        "v":      params["v"],                                 # [1, H] f32
        # GRU layer 0 (input weight split into emb / context halves)
        "wih0_emb": wih0_T[:E].astype(rnn_weight_dtype),        # [E, 3H]
        "wih0_ctx": wih0_T[E:].astype(rnn_weight_dtype),        # [H, 3H]
        "whh0":     params["w_hh_l0"].T.astype(rnn_weight_dtype),
        "bih0":     params["b_ih_l0"], "bhh0": params["b_hh_l0"],
        # GRU layer 1
        "wih1":     params["w_ih_l1"].T.astype(rnn_weight_dtype),
        "whh1":     params["w_hh_l1"].T.astype(rnn_weight_dtype),
        "bih1":     params["b_ih_l1"], "bhh1": params["b_hh_l1"],
        # fused output projection (single [E+2H, V] weight, streamed in tiles)
        "w_out_T":  params["w_out"].T.astype(proj_weight_dtype),
        "b_out":    params["b_out"],                            # [1, V] f32
    }


def prepare_encoder(encoder_outputs):
    """[S, B, H] -> [B, S, H]; run once per source sequence."""
    return jnp.transpose(encoder_outputs, (1, 0, 2))


# ---------------------------------------------------------------------------
# Per-step forward (expects prepared params + batch-major encoder outputs)
# ---------------------------------------------------------------------------
def decoder_forward(token_ids, hidden, enc_b, prepped, *, vocab_tile=None):
    # Embedding lookup (gather) + eval-mode dropout (identity) stay in XLA glue.
    emb = jnp.take(prepped["embedding"], token_ids, axis=0)            # [B, E]
    L, B, H = hidden.shape
    S = enc_b.shape[1]
    E = emb.shape[1]
    K, V = prepped["w_out_T"].shape                                     # K = E + 2H
    assert L == 2, "kernel hard-codes num_layers=2 (module default)"
    f32 = jnp.float32

    vmem = pl.BlockSpec(memory_space=pltpu.MemorySpace.VMEM)
    rnn_wbytes = jnp.dtype(prepped["wa_h"].dtype).itemsize

    # explicit VMEM budget for kernel 1 (resident enc + all RNN/attn weights)
    k1_bytes = (4 * (B * E + B * S * H + L * B * H            # f32 activations in
                     + L * B * H + B * H + B * S              # f32 outputs
                     + 4 * B * S * H)                         # temporaries (energy, ...)
                + rnn_wbytes * (2 * H * H + (E + H) * 3 * H
                                + 3 * H * 3 * H)              # streamed weights
                + 4 * (2 * H + 4 * 3 * H))                    # small f32 vectors
    k1_vmem = int(min(64 * 1024 * 1024, max(32 * 1024 * 1024, 2 * k1_bytes)))

    attn_gru_args = (emb, hidden, enc_b,
                     prepped["wa_h"], prepped["wa_e"], prepped["attn_b"], prepped["v"],
                     prepped["wih0_emb"], prepped["wih0_ctx"], prepped["whh0"],
                     prepped["bih0"], prepped["bhh0"],
                     prepped["wih1"], prepped["whh1"],
                     prepped["bih1"], prepped["bhh1"])

    new_hidden, context, attn_weight = pl.pallas_call(
        attn_gru_kernel,
        out_shape=(jax.ShapeDtypeStruct((L, B, H), f32),
                   jax.ShapeDtypeStruct((B, H), f32),
                   jax.ShapeDtypeStruct((B, S), f32)),
        in_specs=[vmem] * len(attn_gru_args),
        out_specs=(vmem, vmem, vmem),
        compiler_params=pltpu.CompilerParams(vmem_limit_bytes=k1_vmem),
    )(*attn_gru_args)

    # ---- fused vocab projection: x = [emb, h1, ctx] (tiny concat in XLA) ----
    x = jnp.concatenate([emb, new_hidden[1], context], axis=1)          # [B, E+2H]

    wdt = prepped["w_out_T"].dtype
    wbytes = jnp.dtype(wdt).itemsize
    if vocab_tile is None:
        # big tiles amortize the ~0.35 us/step grid overhead; bf16 streams 2048.
        # TODO(synk): on v7x pick tv so cdiv(V, tv) is even (2-TC load balance).
        tv = 2048 if wbytes <= 2 else 1024
    else:
        tv = vocab_tile
    tv = min(tv, V)
    nt = pl.cdiv(V, tv)

    # double-buffered weight tile + bias + output + activations, with headroom;
    # clamped to 64 MiB so it is also valid on v7x's 64 MiB physical VMEM.
    k2_bytes = 2 * (K * tv * wbytes + tv * 4 + B * tv * 4) + 2 * B * K * 4
    k2_vmem = int(min(64 * 1024 * 1024, max(32 * 1024 * 1024, 4 * k2_bytes)))

    cost = pl.CostEstimate(
        flops=2 * B * V * K,
        transcendentals=0,
        bytes_accessed=int(K * V * wbytes + V * 4 + B * K * 4 + B * V * 4))

    logits = pl.pallas_call(
        vocab_proj_kernel,
        grid=(nt,),
        out_shape=jax.ShapeDtypeStruct((B, V), f32),
        in_specs=[
            pl.BlockSpec((B, K), lambda i: (0, 0)),
            # TODO(synk): sweep pipeline_mode=pl.Buffered(3) on this spec once
            # production tile sizes are fixed (hide DMA issue latency).
            pl.BlockSpec((K, tv), lambda i: (0, i)),
            pl.BlockSpec((1, tv), lambda i: (0, i)),
        ],
        out_specs=pl.BlockSpec((B, tv), lambda i: (0, i)),
        compiler_params=pltpu.CompilerParams(
            dimension_semantics=("parallel",),
            vmem_limit_bytes=k2_vmem),
        cost_estimate=cost,
    )(x, prepped["w_out_T"], prepped["b_out"])

    # Cross-tile normalization (one fused XLA elementwise+reduce on [B, V]).
    output = jax.nn.log_softmax(logits, axis=1)
    return output, new_hidden, attn_weight


# ---------------------------------------------------------------------------
# Pure-JAX reference (correctness check, mirrors the PyTorch forward)
# ---------------------------------------------------------------------------
def decoder_reference(token_ids, hidden, enc, p):
    emb = jnp.take(p["embedding"], token_ids, axis=0)
    S, B, H = enc.shape
    h_last = hidden[-1]
    cat = jnp.concatenate([jnp.broadcast_to(h_last[None], (S, B, H)), enc], axis=2)
    energy = jnp.tanh(cat @ p["attn_w"].T + p["attn_b"][0])
    scores = jnp.einsum("sbh,h->bs", energy, p["v"][0])
    attn = jax.nn.softmax(scores, axis=1)
    context = jnp.einsum("bs,sbh->bh", attn, enc)
    x0 = jnp.concatenate([emb, context], axis=1)

    def cell(x, h, Wih, Whh, bih, bhh):
        gi = x @ Wih.T + bih[0]
        gh = h @ Whh.T + bhh[0]
        r = jax.nn.sigmoid(gi[:, :H] + gh[:, :H])
        z = jax.nn.sigmoid(gi[:, H:2 * H] + gh[:, H:2 * H])
        n = jnp.tanh(gi[:, 2 * H:] + r * gh[:, 2 * H:])
        return (1.0 - z) * n + z * h

    h0 = cell(x0, hidden[0], p["w_ih_l0"], p["w_hh_l0"], p["b_ih_l0"], p["b_hh_l0"])
    h1 = cell(h0, hidden[1], p["w_ih_l1"], p["w_hh_l1"], p["b_ih_l1"], p["b_hh_l1"])
    out_in = jnp.concatenate([emb, h1, context], axis=1)
    logits = out_in @ p["w_out"].T + p["b_out"][0]
    out = jax.nn.log_softmax(logits, axis=1)
    return out, jnp.stack([h0, h1], axis=0), attn


# ---------------------------------------------------------------------------
# Deterministic parameter init (shapes from Decoder.__init__)
# ---------------------------------------------------------------------------
def init_params(key, V, E, H):
    ks = jax.random.split(key, 16)
    f = jnp.float32
    return {
        "embedding": jax.random.normal(ks[0], (V, E), f),
        "attn_w":    0.1 * jax.random.normal(ks[1], (H, 2 * H), f),
        "attn_b":    0.1 * jax.random.normal(ks[2], (1, H), f),
        "v":         jax.random.normal(ks[3], (1, H), f) / jnp.sqrt(H).astype(f),
        "w_ih_l0":   0.1 * jax.random.normal(ks[4], (3 * H, E + H), f),
        "w_hh_l0":   0.1 * jax.random.normal(ks[5], (3 * H, H), f),
        "b_ih_l0":   0.1 * jax.random.normal(ks[6], (1, 3 * H), f),
        "b_hh_l0":   0.1 * jax.random.normal(ks[7], (1, 3 * H), f),
        "w_ih_l1":   0.1 * jax.random.normal(ks[8], (3 * H, H), f),
        "w_hh_l1":   0.1 * jax.random.normal(ks[9], (3 * H, H), f),
        "b_ih_l1":   0.1 * jax.random.normal(ks[10], (1, 3 * H), f),
        "b_hh_l1":   0.1 * jax.random.normal(ks[11], (1, 3 * H), f),
        "w_out":     0.1 * jax.random.normal(ks[12], (V, E + 2 * H), f),
        "b_out":     0.1 * jax.random.normal(ks[13], (1, V), f),
    }


if __name__ == "__main__":
    # Small shapes; V=384 so the vocab-tiled kernel actually runs a 3-step grid.
    B, S, E, H, V, L = 2, 8, 16, 32, 384, 2

    key = jax.random.PRNGKey(0)
    kp, k1, k2, k3 = jax.random.split(key, 4)
    params = init_params(kp, V, E, H)

    token_ids = jax.random.randint(k1, (B,), 0, V, dtype=jnp.int32)      # input
    hidden = jax.random.normal(k2, (L, B, H), jnp.float32)               # hidden
    encoder_outputs = jax.random.normal(k3, (S, B, H), jnp.float32)      # encoder_outputs

    # one-time prep (per model / per source sequence, NOT per decode step)
    enc_b = prepare_encoder(encoder_outputs)
    prepped_f32 = prepare_params(params, rnn_weight_dtype=jnp.float32,
                                 proj_weight_dtype=jnp.float32)
    prepped_bf16 = prepare_params(params)   # bf16 weight streaming (default)

    fwd = jax.jit(decoder_forward, static_argnames=("vocab_tile",))

    ref_out, ref_hid, ref_attn = decoder_reference(
        token_ids, hidden, encoder_outputs, params)

    # exact-precision path (f32 weights), 3-tile vocab grid
    out, new_hidden, attn_w = jax.block_until_ready(
        fwd(token_ids, hidden, enc_b, prepped_f32, vocab_tile=128))
    assert out.shape == (B, V) and new_hidden.shape == (L, B, H) and attn_w.shape == (B, S)
    assert jnp.allclose(out, ref_out, atol=1e-3, rtol=1e-3)
    assert jnp.allclose(new_hidden, ref_hid, atol=1e-3, rtol=1e-3)
    assert jnp.allclose(attn_w, ref_attn, atol=1e-3, rtol=1e-3)

    # default bf16 weight-streaming path (HBM-BW bound matmuls), tiled grid
    out_bf, hid_bf, attn_bf = jax.block_until_ready(
        fwd(token_ids, hidden, enc_b, prepped_bf16, vocab_tile=128))
    assert jnp.allclose(out_bf, ref_out, atol=5e-2, rtol=5e-2)
    assert jnp.allclose(hid_bf, ref_hid, atol=5e-2, rtol=5e-2)
    assert jnp.allclose(attn_bf, ref_attn, atol=5e-2, rtol=5e-2)

    # default tile selection (single full-V block at this small V)
    out_def, _, _ = jax.block_until_ready(
        fwd(token_ids, hidden, enc_b, prepped_bf16))
    assert jnp.allclose(out_def, ref_out, atol=5e-2, rtol=5e-2)

    print("KERNEL_OK")
</pallas_src>

<mosaic_0001>
module attributes {stable_mosaic.version = 11 : i64} {
  func.func @vocab_proj_kernel(%arg0: i32, %arg1: memref<2x80xf32, #tpu.memory_space<vmem>>, %arg2: memref<80x128xf32, #tpu.memory_space<vmem>>, %arg3: memref<1x128xf32, #tpu.memory_space<vmem>>, %arg4: memref<2x128xf32, #tpu.memory_space<vmem>>) attributes {dimension_semantics = [#tpu.dimension_semantics<parallel>], iteration_bounds = array<i64: 3>, scalar_prefetch = 0 : i64, scratch_operands = 0 : i64, tpu.core_type = #tpu.core_type<tc>, window_params = [{pipeline_mode = #tpu.pipeline_mode<synchronous>, transform_indices = @transform_0, window_bounds = array<i64: 2, 80>}, {transform_indices = @transform_1, window_bounds = array<i64: 80, 128>}, {transform_indices = @transform_2, window_bounds = array<i64: 1, 128>}, {transform_indices = @transform_3, window_bounds = array<i64: 2, 128>}]} {
    %c0 = arith.constant 0 : index
    %c0_0 = arith.constant 0 : index
    %0 = vector.load %arg1[%c0, %c0_0] : memref<2x80xf32, #tpu.memory_space<vmem>>, vector<2x80xf32>
    %c0_1 = arith.constant 0 : index
    %c0_2 = arith.constant 0 : index
    %1 = vector.load %arg2[%c0_1, %c0_2] : memref<80x128xf32, #tpu.memory_space<vmem>>, vector<80x128xf32>
    %cst = arith.constant dense<0.000000e+00> : vector<2x128xf32>
    %2 = tpu.matmul %0, %1, %cst {dimension_numbers = #tpu.dot_dimension_numbers<[1], [0], [0], [1], [0, 0, 1, 1], [], []>} : vector<2x80xf32>, vector<80x128xf32>, vector<2x128xf32> -> vector<2x128xf32>
    %c0_3 = arith.constant 0 : index
    %c0_4 = arith.constant 0 : index
    %3 = vector.load %arg3[%c0_3, %c0_4] : memref<1x128xf32, #tpu.memory_space<vmem>>, vector<1x128xf32>
    %4 = vector.broadcast %3 : vector<1x128xf32> to vector<2x128xf32>
    %5 = arith.addf %2, %4 : vector<2x128xf32>
    %c0_5 = arith.constant 0 : index
    %c0_6 = arith.constant 0 : index
    %6 = vector.load %arg4[%c0_5, %c0_6] : memref<2x128xf32, #tpu.memory_space<vmem>>, vector<2x128xf32>
    tpu.vector_store %arg4[%c0_5, %c0_6], %5 {strides = array<i32>} : memref<2x128xf32, #tpu.memory_space<vmem>>, vector<2x128xf32>,
    return
  }
  func.func @transform_0(%arg0: i32) -> (i32, i32) {
    %c0_i32 = arith.constant 0 : i32
    %c0_i32_0 = arith.constant 0 : i32
    %c0_i32_1 = arith.constant 0 : i32
    return %c0_i32, %c0_i32_0 : i32, i32
  }
  func.func @transform_1(%arg0: i32) -> (i32, i32) {
    %c0_i32 = arith.constant 0 : i32
    %c0_i32_0 = arith.constant 0 : i32
    return %c0_i32, %arg0 : i32, i32
  }
  func.func @transform_2(%arg0: i32) -> (i32, i32) {
    %c0_i32 = arith.constant 0 : i32
    %c0_i32_0 = arith.constant 0 : i32
    return %c0_i32, %arg0 : i32, i32
  }
  func.func @transform_3(%arg0: i32) -> (i32, i32) {
    %c0_i32 = arith.constant 0 : i32
    %c0_i32_0 = arith.constant 0 : i32
    return %c0_i32, %arg0 : i32, i32
  }
}

module attributes {stable_mosaic.version = 11 : i64} {
  func.func @attn_gru_kernel(%arg0: memref<2x16xf32, #tpu.memory_space<vmem>>, %arg1: memref<2x2x32xf32, #tpu.memory_space<vmem>>, %arg2: memref<2x8x32xf32, #tpu.memory_space<vmem>>, %arg3: memref<32x32xf32, #tpu.memory_space<vmem>>, %arg4: memref<32x32xf32, #tpu.memory_space<vmem>>, %arg5: memref<1x32xf32, #tpu.memory_space<vmem>>, %arg6: memref<1x32xf32, #tpu.memory_space<vmem>>, %arg7: memref<16x96xf32, #tpu.memory_space<vmem>>, %arg8: memref<32x96xf32, #tpu.memory_space<vmem>>, %arg9: memref<32x96xf32, #tpu.memory_space<vmem>>, %arg10: memref<1x96xf32, #tpu.memory_space<vmem>>, %arg11: memref<1x96xf32, #tpu.memory_space<vmem>>, %arg12: memref<32x96xf32, #tpu.memory_space<vmem>>, %arg13: memref<32x96xf32, #tpu.memory_space<vmem>>, %arg14: memref<1x96xf32, #tpu.memory_space<vmem>>, %arg15: memref<1x96xf32, #tpu.memory_space<vmem>>, %arg16: memref<2x2x32xf32, #tpu.memory_space<vmem>>, %arg17: memref<2x32xf32, #tpu.memory_space<vmem>>, %arg18: memref<2x8xf32, #tpu.memory_space<vmem>>) attributes {dimension_semantics = [], scalar_prefetch = 0 : i64, scratch_operands = 0 : i64, tpu.core_type = #tpu.core_type<tc>} {
    %c0 = arith.constant 0 : index
    %c0_0 = arith.constant 0 : index
    %0 = vector.load %arg0[%c0, %c0_0] : memref<2x16xf32, #tpu.memory_space<vmem>>, vector<2x16xf32>
    %c0_1 = arith.constant 0 : index
    %c0_2 = arith.constant 0 : index
    %c0_3 = arith.constant 0 : index
    %1 = vector.load %arg2[%c0_1, %c0_2, %c0_3] : memref<2x8x32xf32, #tpu.memory_space<vmem>>, vector<2x8x32xf32>
    %c1 = arith.constant 1 : index
    %c0_4 = arith.constant 0 : index
    %c0_5 = arith.constant 0 : index
    %2 = vector.load %arg1[%c1, %c0_4, %c0_5] : memref<2x2x32xf32, #tpu.memory_space<vmem>>, vector<1x2x32xf32>
    %3 = vector.shape_cast %2 : vector<1x2x32xf32> to vector<2x32xf32>
    %c0_6 = arith.constant 0 : index
    %c0_7 = arith.constant 0 : index
    %4 = vector.load %arg3[%c0_6, %c0_7] : memref<32x32xf32, #tpu.memory_space<vmem>>, vector<32x32xf32>
    %cst = arith.constant dense<0.000000e+00> : vector<2x32xf32>
    %5 = tpu.matmul %3, %4, %cst {dimension_numbers = #tpu.dot_dimension_numbers<[1], [0], [0], [1], [0, 0, 1, 1], [], []>} : vector<2x32xf32>, vector<32x32xf32>, vector<2x32xf32> -> vector<2x32xf32>
    %6 = vector.shape_cast %1 : vector<2x8x32xf32> to vector<16x32xf32>
    %c0_8 = arith.constant 0 : index
    %c0_9 = arith.constant 0 : index
    %7 = vector.load %arg4[%c0_8, %c0_9] : memref<32x32xf32, #tpu.memory_space<vmem>>, vector<32x32xf32>
    %cst_10 = arith.constant dense<0.000000e+00> : vector<16x32xf32>
    %8 = tpu.matmul %6, %7, %cst_10 {dimension_numbers = #tpu.dot_dimension_numbers<[1], [0], [0], [1], [0, 0, 1, 1], [], []>} : vector<16x32xf32>, vector<32x32xf32>, vector<16x32xf32> -> vector<16x32xf32>
    %9 = vector.shape_cast %8 : vector<16x32xf32> to vector<2x8x32xf32>
    %10 = vector.shape_cast %5 : vector<2x32xf32> to vector<2x1x32xf32>
    %11 = vector.broadcast %10 : vector<2x1x32xf32> to vector<2x8x32xf32>
    %12 = arith.addf %11, %9 : vector<2x8x32xf32>
    %c0_11 = arith.constant 0 : index
    %c0_12 = arith.constant 0 : index
    %13 = vector.load %arg5[%c0_11, %c0_12] : memref<1x32xf32, #tpu.memory_space<vmem>>, vector<1x32xf32>
    %14 = vector.shape_cast %13 : vector<1x32xf32> to vector<1x1x32xf32>
    %15 = vector.broadcast %14 : vector<1x1x32xf32> to vector<2x8x32xf32>
    %16 = arith.addf %12, %15 : vector<2x8x32xf32>
    %17 = math.tanh %16 : vector<2x8x32xf32>
    %c0_13 = arith.constant 0 : index
    %c0_14 = arith.constant 0 : index
    %18 = vector.load %arg6[%c0_13, %c0_14] : memref<1x32xf32, #tpu.memory_space<vmem>>, vector<1x32xf32>
    %19 = vector.shape_cast %18 : vector<1x32xf32> to vector<1x1x32xf32>
    %20 = vector.broadcast %19 : vector<1x1x32xf32> to vector<2x8x32xf32>
    %21 = arith.mulf %17, %20 : vector<2x8x32xf32>
    %cst_15 = arith.constant dense<0.000000e+00> : vector<2x8xf32>
    %22 = vector.multi_reduction <add>, %21, %cst_15 [2] : vector<2x8x32xf32> to vector<2x8xf32>
    %cst_16 = arith.constant dense<0xFF800000> : vector<2xf32>
    %23 = vector.multi_reduction <maximumf>, %22, %cst_16 [1] : vector<2x8xf32> to vector<2xf32>
    %24 = vector.shape_cast %23 : vector<2xf32> to vector<2x1xf32>
    %25 = vector.broadcast %24 : vector<2x1xf32> to vector<2x8xf32>
    %26 = arith.subf %22, %25 : vector<2x8xf32>
    %27 = math.exp %26 : vector<2x8xf32>
    %cst_17 = arith.constant dense<0.000000e+00> : vector<2xf32>
    %28 = vector.multi_reduction <add>, %27, %cst_17 [1] : vector<2x8xf32> to vector<2xf32>
    %29 = vector.shape_cast %28 : vector<2xf32> to vector<2x1xf32>
    %30 = vector.broadcast %29 : vector<2x1xf32> to vector<2x8xf32>
    %31 = arith.divf %27, %30 : vector<2x8xf32>
    %c0_18 = arith.constant 0 : index
    %c0_19 = arith.constant 0 : index
    %32 = vector.load %arg18[%c0_18, %c0_19] : memref<2x8xf32, #tpu.memory_space<vmem>>, vector<2x8xf32>
    tpu.vector_store %arg18[%c0_18, %c0_19], %31 {strides = array<i32>} : memref<2x8xf32, #tpu.memory_space<vmem>>, vector<2x8xf32>,
    %33 = vector.shape_cast %31 : vector<2x8xf32> to vector<2x8x1xf32>
    %34 = vector.broadcast %33 : vector<2x8x1xf32> to vector<2x8x32xf32>
    %35 = arith.mulf %34, %1 : vector<2x8x32xf32>
    %cst_20 = arith.constant dense<0.000000e+00> : vector<2x32xf32>
    %36 = vector.multi_reduction <add>, %35, %cst_20 [1] : vector<2x8x32xf32> to vector<2x32xf32>
    %c0_21 = arith.constant 0 : index
    %c0_22 = arith.constant 0 : index
    %37 = vector.load %arg17[%c0_21, %c0_22] : memref<2x32xf32, #tpu.memory_space<vmem>>, vector<2x32xf32>
    tpu.vector_store %arg17[%c0_21, %c0_22], %36 {strides = array<i32>} : memref<2x32xf32, #tpu.memory_space<vmem>>, vector<2x32xf32>,
    %c0_23 = arith.constant 0 : index
    %c0_24 = arith.constant 0 : index
    %c0_25 = arith.constant 0 : index
    %38 = vector.load %arg1[%c0_23, %c0_24, %c0_25] : memref<2x2x32xf32, #tpu.memory_space<vmem>>, vector<1x2x32xf32>
    %39 = vector.shape_cast %38 : vector<1x2x32xf32> to vector<2x32xf32>
    %c1_26 = arith.constant 1 : index
    %c0_27 = arith.constant 0 : index
    %c0_28 = arith.constant 0 : index
    %40 = vector.load %arg1[%c1_26, %c0_27, %c0_28] : memref<2x2x32xf32, #tpu.memory_space<vmem>>, vector<1x2x32xf32>
    %41 = vector.shape_cast %40 : vector<1x2x32xf32> to vector<2x32xf32>
    %c0_29 = arith.constant 0 : index
    %c0_30 = arith.constant 0 : index
    %42 = vector.load %arg7[%c0_29, %c0_30] : memref<16x96xf32, #tpu.memory_space<vmem>>, vector<16x96xf32>
    %cst_31 = arith.constant dense<0.000000e+00> : vector<2x96xf32>
    %43 = tpu.matmul %0, %42, %cst_31 {dimension_numbers = #tpu.dot_dimension_numbers<[1], [0], [0], [1], [0, 0, 1, 1], [], []>} : vector<2x16xf32>, vector<16x96xf32>, vector<2x96xf32> -> vector<2x96xf32>
    %c0_32 = arith.constant 0 : index
    %c0_33 = arith.constant 0 : index
    %44 = vector.load %arg8[%c0_32, %c0_33] : memref<32x96xf32, #tpu.memory_space<vmem>>, vector<32x96xf32>
    %cst_34 = arith.constant dense<0.000000e+00> : vector<2x96xf32>
    %45 = tpu.matmul %36, %44, %cst_34 {dimension_numbers = #tpu.dot_dimension_numbers<[1], [0], [0], [1], [0, 0, 1, 1], [], []>} : vector<2x32xf32>, vector<32x96xf32>, vector<2x96xf32> -> vector<2x96xf32>
    %46 = arith.addf %43, %45 : vector<2x96xf32>
    %c0_35 = arith.constant 0 : index
    %c0_36 = arith.constant 0 : index
    %47 = vector.load %arg10[%c0_35, %c0_36] : memref<1x96xf32, #tpu.memory_space<vmem>>, vector<1x96xf32>
    %48 = vector.broadcast %47 : vector<1x96xf32> to vector<2x96xf32>
    %49 = arith.addf %46, %48 : vector<2x96xf32>
    %c0_37 = arith.constant 0 : index
    %c0_38 = arith.constant 0 : index
    %50 = vector.load %arg9[%c0_37, %c0_38] : memref<32x96xf32, #tpu.memory_space<vmem>>, vector<32x96xf32>
    %cst_39 = arith.constant dense<0.000000e+00> : vector<2x96xf32>
    %51 = tpu.matmul %39, %50, %cst_39 {dimension_numbers = #tpu.dot_dimension_numbers<[1], [0], [0], [1], [0, 0, 1, 1], [], []>} : vector<2x32xf32>, vector<32x96xf32>, vector<2x96xf32> -> vector<2x96xf32>
    %c0_40 = arith.constant 0 : index
    %c0_41 = arith.constant 0 : index
    %52 = vector.load %arg11[%c0_40, %c0_41] : memref<1x96xf32, #tpu.memory_space<vmem>>, vector<1x96xf32>
    %53 = vector.broadcast %52 : vector<1x96xf32> to vector<2x96xf32>
    %54 = arith.addf %51, %53 : vector<2x96xf32>
    %55 = vector.extract_strided_slice %49 {offsets = [0, 0], sizes = [2, 32], strides = [1, 1]} : vector<2x96xf32> to vector<2x32xf32>
    %56 = vector.extract_strided_slice %54 {offsets = [0, 0], sizes = [2, 32], strides = [1, 1]} : vector<2x96xf32> to vector<2x32xf32>
    %57 = arith.addf %55, %56 : vector<2x32xf32>
    %58 = arith.negf %57 : vector<2x32xf32>
    %59 = math.exp %58 : vector<2x32xf32>
    %cst_42 = arith.constant 1.000000e+00 : f32
    %60 = vector.broadcast %cst_42 : f32 to vector<2x32xf32>
    %61 = arith.addf %60, %59 : vector<2x32xf32>
    %62 = arith.divf %60, %61 : vector<2x32xf32>
    %63 = vector.extract_strided_slice %49 {offsets = [0, 32], sizes = [2, 32], strides = [1, 1]} : vector<2x96xf32> to vector<2x32xf32>
    %64 = vector.extract_strided_slice %54 {offsets = [0, 32], sizes = [2, 32], strides = [1, 1]} : vector<2x96xf32> to vector<2x32xf32>
    %65 = arith.addf %63, %64 : vector<2x32xf32>
    %66 = arith.negf %65 : vector<2x32xf32>
    %67 = math.exp %66 : vector<2x32xf32>
    %cst_43 = arith.constant 1.000000e+00 : f32
    %68 = vector.broadcast %cst_43 : f32 to vector<2x32xf32>
    %69 = arith.addf %68, %67 : vector<2x32xf32>
    %70 = arith.divf %68, %69 : vector<2x32xf32>
    %71 = vector.extract_strided_slice %49 {offsets = [0, 64], sizes = [2, 32], strides = [1, 1]} : vector<2x96xf32> to vector<2x32xf32>
    %72 = vector.extract_strided_slice %54 {offsets = [0, 64], sizes = [2, 32], strides = [1, 1]} : vector<2x96xf32> to vector<2x32xf32>
    %73 = arith.mulf %62, %72 : vector<2x32xf32>
    %74 = arith.addf %71, %73 : vector<2x32xf32>
    %75 = math.tanh %74 : vector<2x32xf32>
    %cst_44 = arith.constant 1.000000e+00 : f32
    %76 = vector.broadcast %cst_44 : f32 to vector<2x32xf32>
    %77 = arith.subf %76, %70 : vector<2x32xf32>
    %78 = arith.mulf %77, %75 : vector<2x32xf32>
    %79 = arith.mulf %70, %39 : vector<2x32xf32>
    %80 = arith.addf %78, %79 : vector<2x32xf32>
    %c0_45 = arith.constant 0 : index
    %c0_46 = arith.constant 0 : index
    %81 = vector.load %arg12[%c0_45, %c0_46] : memref<32x96xf32, #tpu.memory_space<vmem>>, vector<32x96xf32>
    %cst_47 = arith.constant dense<0.000000e+00> : vector<2x96xf32>
    %82 = tpu.matmul %80, %81, %cst_47 {dimension_numbers = #tpu.dot_dimension_numbers<[1], [0], [0], [1], [0, 0, 1, 1], [], []>} : vector<2x32xf32>, vector<32x96xf32>, vector<2x96xf32> -> vector<2x96xf32>
    %c0_48 = arith.constant 0 : index
    %c0_49 = arith.constant 0 : index
    %83 = vector.load %arg14[%c0_48, %c0_49] : memref<1x96xf32, #tpu.memory_space<vmem>>, vector<1x96xf32>
    %84 = vector.broadcast %83 : vector<1x96xf32> to vector<2x96xf32>
    %85 = arith.addf %82, %84 : vector<2x96xf32>
    %c0_50 = arith.constant 0 : index
    %c0_51 = arith.constant 0 : index
    %86 = vector.load %arg13[%c0_50, %c0_51] : memref<32x96xf32, #tpu.memory_space<vmem>>, vector<32x96xf32>
    %cst_52 = arith.constant dense<0.000000e+00> : vector<2x96xf32>
    %87 = tpu.matmul %41, %86, %cst_52 {dimension_numbers = #tpu.dot_dimension_numbers<[1], [0], [0], [1], [0, 0, 1, 1], [], []>} : vector<2x32xf32>, vector<32x96xf32>, vector<2x96xf32> -> vector<2x96xf32>
    %c0_53 = arith.constant 0 : index
    %c0_54 = arith.constant 0 : index
    %88 = vector.load %arg15[%c0_53, %c0_54] : memref<1x96xf32, #tpu.memory_space<vmem>>, vector<1x96xf32>
    %89 = vector.broadcast %88 : vector<1x96xf32> to vector<2x96xf32>
    %90 = arith.addf %87, %89 : vector<2x96xf32>
    %91 = vector.extract_strided_slice %85 {offsets = [0, 0], sizes = [2, 32], strides = [1, 1]} : vector<2x96xf32> to vector<2x32xf32>
    %92 = vector.extract_strided_slice %90 {offsets = [0, 0], sizes = [2, 32], strides = [1, 1]} : vector<2x96xf32> to vector<2x32xf32>
    %93 = arith.addf %91, %92 : vector<2x32xf32>
    %94 = arith.negf %93 : vector<2x32xf32>
    %95 = math.exp %94 : vector<2x32xf32>
    %cst_55 = arith.constant 1.000000e+00 : f32
    %96 = vector.broadcast %cst_55 : f32 to vector<2x32xf32>
    %97 = arith.addf %96, %95 : vector<2x32xf32>
    %98 = arith.divf %96, %97 : vector<2x32xf32>
    %99 = vector.extract_strided_slice %85 {offsets = [0, 32], sizes = [2, 32], strides = [1, 1]} : vector<2x96xf32> to vector<2x32xf32>
    %100 = vector.extract_strided_slice %90 {offsets = [0, 32], sizes = [2, 32], strides = [1, 1]} : vector<2x96xf32> to vector<2x32xf32>
    %101 = arith.addf %99, %100 : vector<2x32xf32>
    %102 = arith.negf %101 : vector<2x32xf32>
    %103 = math.exp %102 : vector<2x32xf32>
    %cst_56 = arith.constant 1.000000e+00 : f32
    %104 = vector.broadcast %cst_56 : f32 to vector<2x32xf32>
    %105 = arith.addf %104, %103 : vector<2x32xf32>
    %106 = arith.divf %104, %105 : vector<2x32xf32>
    %107 = vector.extract_strided_slice %85 {offsets = [0, 64], sizes = [2, 32], strides = [1, 1]} : vector<2x96xf32> to vector<2x32xf32>
    %108 = vector.extract_strided_slice %90 {offsets = [0, 64], sizes = [2, 32], strides = [1, 1]} : vector<2x96xf32> to vector<2x32xf32>
    %109 = arith.mulf %98, %108 : vector<2x32xf32>
    %110 = arith.addf %107, %109 : vector<2x32xf32>
    %111 = math.tanh %110 : vector<2x32xf32>
    %cst_57 = arith.constant 1.000000e+00 : f32
    %112 = vector.broadcast %cst_57 : f32 to vector<2x32xf32>
    %113 = arith.subf %112, %106 : vector<2x32xf32>
    %114 = arith.mulf %113, %111 : vector<2x32xf32>
    %115 = arith.mulf %106, %41 : vector<2x32xf32>
    %116 = arith.addf %114, %115 : vector<2x32xf32>
    %c0_58 = arith.constant 0 : index
    %c0_59 = arith.constant 0 : index
    %c0_60 = arith.constant 0 : index
    %117 = vector.load %arg16[%c0_58, %c0_59, %c0_60] : memref<2x2x32xf32, #tpu.memory_space<vmem>>, vector<1x2x32xf32>
    %118 = vector.shape_cast %117 : vector<1x2x32xf32> to vector<2x32xf32>
    %119 = vector.shape_cast %80 : vector<2x32xf32> to vector<1x2x32xf32>
    tpu.vector_store %arg16[%c0_58, %c0_59, %c0_60], %119 {strides = array<i32>} : memref<2x2x32xf32, #tpu.memory_space<vmem>>, vector<1x2x32xf32>,
    %c1_61 = arith.constant 1 : index
    %c0_62 = arith.constant 0 : index
    %c0_63 = arith.constant 0 : index
    %120 = vector.load %arg16[%c1_61, %c0_62, %c0_63] : memref<2x2x32xf32, #tpu.memory_space<vmem>>, vector<1x2x32xf32>
    %121 = vector.shape_cast %120 : vector<1x2x32xf32> to vector<2x32xf32>
    %122 = vector.shape_cast %116 : vector<2x32xf32> to vector<1x2x32xf32>
    tpu.vector_store %arg16[%c1_61, %c0_62, %c0_63], %122 {strides = array<i32>} : memref<2x2x32xf32, #tpu.memory_space<vmem>>, vector<1x2x32xf32>,
    return
  }
}

</mosaic_0001>

<bundles_post_ra>
// kernel: decoder_forward.3
= control target key start
LH: loop header
LB: loop body
LE: loop exit
PB: predicated region body
PF: predicated region fallthrough
CT: control target
= control target key end

     0   :  { %s443_s12 = smov 0   ;;  %s445_s13 = smov 0   ;;  %s507_s0 = inlined_call_operand.vmem [shape: f32[2,80], index: 0, kind: input, shape index: {}]   ;;  %s508_s1 = inlined_call_operand.vmem [shape: f32[80,384], index: 1, kind: input, shape index: {}]   ;;  %s509_s2 = inlined_call_operand.vmem [shape: f32[1,384], index: 2, kind: input, shape index: {}]   ;;  %s510_s3 = inlined_call_operand.vmem [shape: f32[2,384], index: 3, kind: output, shape index: {}]  }
   0x1   :  { %s447_s14 = smov 0  }
   0x2 LB: > { %s362_s15 = sadd.s32 4294967295, %s421_s14   ;;  %s460_s16 = sadd.s32 1, %s421_s14   ;;  %s421_s14 = sphi %s447_s14, %s513_s14   ;;  %s417_s13 = sphi %s445_s13, %s512_s13   ;;  %s413_s12 = sphi %s443_s12, %s511_s12  }
   0x3   : > { %s38_s17 = ssub.s32 %s421_s14, %s460_s16  ;;  %s41_s18 = sadd.s32 1, %s417_s13 }
   0x4   : > { %p39_p0 = scmp.eq.s32.totalorder %s38_s17, 0  ;;  %p48_p1 = scmp.ne.s32.totalorder %s417_s13, %s413_s12 }
   0x5   : > { %p49_p2 = scmp.eq.s32.totalorder %s421_s14, 0  ;;  %p365_p4 = scmp.ge.s32.totalorder %s421_s14, 3 }
   0x6   : > { %s469_s19 = scalar_select %p39_p0, %s417_s13, %s41_s18  }
   0x7   : > { %p50_p3 = por %p49_p2, %p48_p1  ;;  %129 = sbr.rel (%p365_p4) target bundleno = 26 (0x1a), region = 20 }
   0xc   : > { %132 = sbr.rel (!%p50_p3) target bundleno = 26 (0x1a), region = 24  ;;  %s134_s20 = sand.u32 (%p50_p3), 1, %s417_s13  }
   0xd   : > { %s366_s21 = sshll.u32 (%p50_p3), %s421_s14, 3  ;;  %s372_s22 = smul.u32 (%p50_p3), 80, %s134_s20 }
   0xe   : > { %s138_s25 = scalar_lea.vmem (%p50_p3), %s508_s1, %s366_s21 }
   0xf   : > { %v185_v0 = vld [vmem:[%s138_s25] sm:$0xff] (%p50_p3)  ;;  %v187_v1 = vld [vmem:[%s138_s25 + $0x18] sm:$0xff] (%p50_p3)  ;;  %v189_v2 = vld [vmem:[%s138_s25 + $0x30] sm:$0xff] (%p50_p3)  ;;  %s136_s26 = scalar_lea.vmem (%p50_p3), [#allocation2], %s372_s22 }
  0x10   : > { %186 = vst [vmem:[%s136_s26] sm:$0xff] (%p50_p3), %v185_v0  ;;  %v191_v3 = vld [vmem:[%s138_s25 + $0x48] sm:$0xff] (%p50_p3)  ;;  %v193_v4 = vld [vmem:[%s138_s25 + $0x60] sm:$0xff] (%p50_p3)  ;;  %v195_v5 = vld [vmem:[%s138_s25 + $0x78] sm:$0xff] (%p50_p3) }
  0x11   : > { %188 = vst [vmem:[%s136_s26 + $0x8] sm:$0xff] %v187_v1  ;;  %v197_v6 = vld [vmem:[%s138_s25 + $0x90] sm:$0xff]  ;;  %v199_v7 = vld [vmem:[%s138_s25 + $0xa8] sm:$0xff]  ;;  %v201_v8 = vld [vmem:[%s138_s25 + $0xc0] sm:$0xff] }
  0x12   : > { %190 = vst [vmem:[%s136_s26 + $0x10] sm:$0xff] %v189_v2  ;;  %v203_v9 = vld [vmem:[%s138_s25 + $0xd8] sm:$0xff] }
  0x13   : > { %192 = vst [vmem:[%s136_s26 + $0x18] sm:$0xff] %v191_v3 }
  0x14   : > { %194 = vst [vmem:[%s136_s26 + $0x20] sm:$0xff] %v193_v4 }
  0x15   : > { %196 = vst [vmem:[%s136_s26 + $0x28] sm:$0xff] %v195_v5 }
  0x16   : > { %198 = vst [vmem:[%s136_s26 + $0x30] sm:$0xff] %v197_v6 }
  0x17   : > { %200 = vst [vmem:[%s136_s26 + $0x38] sm:$0xff] %v199_v7 }
  0x18   : > { %202 = vst [vmem:[%s136_s26 + $0x40] sm:$0xff] %v201_v8 }
  0x19   : > { %204 = vst [vmem:[%s136_s26 + $0x48] sm:$0xff] %v203_v9 }
  0x1a PF: > { %p367_p5 = scmp.ge.s32.totalorder %s421_s14, 1  ;;  %p215_p6 = scmp.lt.s32.totalorder %s421_s14, 4 }
  0x1c   : > { %p216_p7 = pnand %p367_p5, %p215_p6 }
  0x1d   : > { %s222_s27 = sand.u32 (!%p216_p7), 1, %s413_s12   ;;  %p247_p8 = scmp.lt.s32.totalorder (!%p216_p7), %s362_s15, 2 }
  0x1e   : > { %219 = sbr.rel (%p216_p7) target bundleno = 184 (0xb8), region = 66 }
  0x1f   : > { %s373_s28 = smul.u32 (!%p216_p7), 80, %s222_s27 }
  0x21   : > { %s224_s29 = scalar_lea.vmem (!%p216_p7), [#allocation2], %s373_s28 }
  0x23   : > { %s515_s15 = smov (!%p247_p8, %s362_s15), 2  ;;  %v264_v10 = vld [vmem:[%s224_s29 + $0x48] sm:$0xff]  ;;  %v263_v11 = vld [vmem:[%s224_s29 + $0x40] sm:$0xff]  ;;  %v262_v12 = vld [vmem:[%s224_s29 + $0x38] sm:$0xff]  ;;  %vm269_vm0 = vcmask 654336  }
  0x24   : > { %279 = vmatpush.msra.mxu0 %v264_v10  ;;  %s249_s5 = scalar_lea.vmem %s509_s2, %s515_s15  ;;  %v261_v13 = vld [vmem:[%s224_s29 + $0x30] sm:$0xff]  ;;  %v260_v14 = vld [vmem:[%s224_s29 + $0x28] sm:$0xff]  ;;  %v259_v15 = vld [vmem:[%s224_s29 + $0x20] sm:$0xff]  ;;  %s368_s8 = sshll.u32 %s515_s15, 1 }
  0x25   : > { %v258_v16 = vld [vmem:[%s224_s29 + $0x18] sm:$0xff]  ;;  %v257_v17 = vld [vmem:[%s224_s29 + $0x10] sm:$0xff]  ;;  %v256_v18 = vld [vmem:[%s224_s29 + $0x8] sm:$0xff]  ;;  %s253_s11 = scalar_lea.vmem %s510_s3, %s368_s8 }
  0x26   : > { %280 = vmatpush.msra.mxu0 %v263_v11  ;;  %v255_v19 = vld [vmem:[%s224_s29] sm:$0xff] }
  0x27   : > { %v254_v20 = vld [vmem:[%s507_s0] sm:$0x3] }
  0x28   : > { %281 = vmatpush.msra.mxu0 %v262_v12  ;;  %v398_v21 = vld [vmem:[%s249_s5] ss:$0 sm:$0xff] }
  0x2a   : > { %282 = vmatpush.msra.mxu0 %v261_v13 }
  0x2c   : > { %283 = vmatpush.msra.mxu0 %v260_v14 }
  0x2e   : > { %284 = vmatpush.msra.mxu0 %v259_v15 }
  0x30   : > { %285 = vmatpush.msra.mxu0 %v258_v16 }
  0x32   : > { %286 = vmatpush.msra.mxu0 %v257_v17 }
  0x34   : > { %287 = vmatpush.msra.mxu0 %v256_v18 }
  0x36   : > { %288 = vmatpush.msra.mxu0 %v255_v19 }
  0x37   : > { %369 = vmatmul.msk.f32.vlgmr.msra.gmra.mxu0 %vm269_vm0, %v254_v20 }
  0xb4   : > { %v290_v22 = vpop.f32.mrf.mxu0 }
  0xb5   : > { %v291_v23 = vadd.f32 %v398_v21, %v290_v22 }
  0xb7   : > { %293 = vst [vmem:[%s253_s11] sm:$0x3] %v291_v23 }
  0xb8 PF: > { %p10_p9 = scmp.ge.s32.totalorder %s460_s16, 5   ;;  %s511_s12 = smov %s417_s13 }
  0xb9   : > { %s512_s13 = smov %s469_s19  ;;  %s513_s14 = smov %s460_s16 }
  0xba   :  { %12 = sbr.rel (!%p10_p9) target bundleno = 2 (0x2), region = 108 }

// kernel: decoder_forward.2
= control target key start
LH: loop header
LB: loop body
LE: loop exit
PB: predicated region body
PF: predicated region fallthrough
CT: control target
= control target key end

     0   :  { %s882_s0 = inlined_call_operand.vmem [shape: f32[2,16], index: 0, kind: input, shape index: {}]   ;;  %s883_s1 = inlined_call_operand.vmem [shape: f32[2,2,32], index: 1, kind: input, shape index: {}]   ;;  %s884_s2 = inlined_call_operand.vmem [shape: f32[2,8,32], index: 2, kind: input, shape index: {}]   ;;  %s885_s3 = inlined_call_operand.vmem [shape: f32[32,32], index: 3, kind: input, shape index: {}]   ;;  %s886_s4 = inlined_call_operand.vmem [shape: f32[32,32], index: 4, kind: input, shape index: {}]   ;;  %s887_s5 = inlined_call_operand.vmem [shape: f32[1,32], index: 5, kind: input, shape index: {}]   ;;  %s888_s6 = inlined_call_operand.vmem [shape: f32[1,32], index: 6, kind: input, shape index: {}]   ;;  %s889_s7 = inlined_call_operand.vmem [shape: f32[16,96], index: 7, kind: input, shape index: {}]   ;;  %s890_s8 = inlined_call_operand.vmem [shape: f32[32,96], index: 8, kind: input, shape index: {}]   ;;  %s891_s9 = inlined_call_operand.vmem [shape: f32[32,96], index: 9, kind: input, shape index: {}]   ;;  %s892_s10 = inlined_call_operand.vmem [shape: f32[1,96], index: 10, kind: input, shape index: {}]   ;;  %s893_s11 = inlined_call_operand.vmem [shape: f32[1,96], index: 11, kind: input, shape index: {}]   ;;  %s894_s12 = inlined_call_operand.vmem [shape: f32[32,96], index: 12, kind: input, shape index: {}]   ;;  %s895_s13 = inlined_call_operand.vmem [shape: f32[32,96], index: 13, kind: input, shape index: {}]   ;;  %s896_s14 = inlined_call_operand.vmem [shape: f32[1,96], index: 14, kind: input, shape index: {}]   ;;  %s897_s15 = inlined_call_operand.vmem [shape: f32[1,96], index: 15, kind: input, shape index: {}]   ;;  %s898_s16 = inlined_call_operand.vmem [shape: f32[2,2,32], index: 16, kind: output, shape index: {0}]   ;;  %s899_s17 = inlined_call_operand.vmem [shape: f32[2,32], index: 17, kind: output, shape index: {1}]   ;;  %s900_s18 = inlined_call_operand.hbm [shape: f32[2,8], index: 18, kind: output, shape index: {2}]  }
   0x1   :  { %903 = sst [smem:[#allocation5_spill]] %s882_s0 }
   0x2   :  { %904 = sst [smem:[#allocation6_spill]] %s883_s1 }
   0x3   :  { %905 = sst [smem:[#allocation7_spill]] %s884_s2 }
   0x4   :  { %v65_v0 = vld [vmem:[%s885_s3 + $0x18] sm:$0xff]  ;;  %v64_v2 = vld [vmem:[%s885_s3 + $0x10] sm:$0xff]  ;;  %v63_v4 = vld [vmem:[%s885_s3 + $0x8] sm:$0xff]  ;;  %s906_s30 = sld [smem:[#allocation6_spill]]  ;;  %vm66_vm0 = vcmask 261120  }
   0x5   :  { %v93_v1 = vld [vmem:[%s886_s4 + $0x18] sm:$0xff]  ;;  %82 = vmatpush.msra.mxu0 %v65_v0  ;;  %v92_v3 = vld [vmem:[%s886_s4 + $0x10] sm:$0xff]  ;;  %v91_v5 = vld [vmem:[%s886_s4 + $0x8] sm:$0xff]  ;;  %s907_s1 = sld [smem:[#allocation7_spill]] }
   0x6   :  { %112 = vmatpush.msra.mxu1 %v93_v1  ;;  %v62_v6 = vld [vmem:[%s885_s3] sm:$0xff] }
   0x7   :  { %v90_v7 = vld [vmem:[%s886_s4] sm:$0xff]  ;;  %83 = vmatpush.msra.mxu0 %v64_v2 }
   0x8   :  { %113 = vmatpush.msra.mxu1 %v92_v3 }
   0x9   :  { %84 = vmatpush.msra.mxu0 %v63_v4 }
   0xa   :  { %v532_v8 = vld [vmem:[%s906_s30 + $0x2] sm:$0x3]  ;;  %114 = vmatpush.msra.mxu1 %v91_v5 }
   0xb   :  { %v739_v9 = vld [vmem:[%s907_s1] sm:$0xff] }
   0xc   :  { %24 = vsyncpa [#allocation3], 0  ;;  %85 = vmatpush.msra.mxu0 %v62_v6  ;;  %115 = vmatpush.msra.mxu1 %v90_v7  ;;  %v747_v10 = vld [vmem:[%s907_s1 + $0x8] sm:$0xff]  ;;  %v553_v14 = vld [vmem:[%s887_s5] ss:$0 sm:$0xff]  ;;  %v153_v30 = vlaneseq  ;;  %vm157_vm1 = vcmask 1041409  }
   0xd   :  { %533 = vmatmul.msk.f32.vlgmr.msra.gmra.mxu0 %vm66_vm0, %v532_v8  ;;  %534 = vmatmul.msk.f32.vlgmr.msra.gmra.mxu1 %vm66_vm0, %v739_v9  ;;  %v554_v21 = vld [vmem:[%s888_s6] ss:$0 sm:$0xff]  ;;  %vm160_vm2 = vcmask 58368   ;;  %v609_v37 = vmov 0   ;;  %v265_v53 = vld [vmem:[%s889_s7 + $0x8] sm:$0xff]  ;;  %s908_s27 = sld [smem:[#allocation5_spill]] }
   0xe   :  { %v759_v31 = vand.u32 127, %v153_v30  ;;  %551 = vset.pattern.permute.xlu2 %v609_v37  ;;  %550 = vset.pattern.permute.xlu1 %v609_v37  ;;  %v264_v54 = vld [vmem:[%s889_s7] sm:$0xff]  ;;  %vm292_vm3 = vcmask 130048   ;;  %v324_v56 = vld [vmem:[%s891_s9 + $0x18] sm:$0xff]  ;;  %v323_v57 = vld [vmem:[%s891_s9 + $0x10] sm:$0xff]  ;;  %s611_s29 = smov 64  }
   0xf   :  { %552 = vset.pattern.permute.xlu0 %v609_v37  ;;  %310 = vmatpush.msra.mxu3 %v265_v53  ;;  %v322_v58 = vld [vmem:[%s891_s9 + $0x8] sm:$0xff]  ;;  %v321_v59 = vld [vmem:[%s891_s9] sm:$0xff]  ;;  %s610_s9 = smov 32   ;;  %vm260_vm12 = vcmask 254976   ;;  %s519_s3 = sshll.u32 %s900_s18, 4  ;;  %s520_s3 = int_to_ptr.hbm [resolvable:$true] %s519_s3 }
  0x10   :  { %v262_v61 = vld [vmem:[%s906_s30] sm:$0x3] }
  0x11   :  { %311 = vmatpush.msra.mxu3 %v264_v54 }
  0x13   :  { %v57_v55 = vld [vmem:[%s908_s27] sm:$0x3]  ;;  %344 = vmatpush.msrb.mxu3 %v324_v56 }
  0x14   :  { %538 = vmatmul.msk.f32.vlgmr.msra.gmra.mxu3 %vm292_vm3, %v57_v55 }
  0x15   :  { %535 = vmatmul.msk.f32.gmra.mxu1 %vm66_vm0, %v747_v10  ;;  %345 = vmatpush.msrb.mxu3 %v323_v57 }
  0x17   :  { %346 = vmatpush.msrb.mxu3 %v322_v58 }
  0x19   :  { %347 = vmatpush.msrb.mxu3 %v321_v59 }
  0x1c   :  { %539 = vmatmul.msk.f32.vlgmr.msrb.gmra.mxu3 %vm66_vm0, %v262_v61 }
  0x8a   :  { %v87_v11 = vpop.f32.mrf.mxu0  ;;  %v117_v12 = vpop.f32.mrf.mxu1 }
  0x8b   :  { %v125_v13 = vperm.slane %v87_v11, 0  ;;  %v124_v15 = vrot.slane %v87_v11, 1 }
  0x8d   :  { %v129_v16 = vadd.f32 %v125_v13, %v117_v12  ;;  %v126_v18 = vperm.slane %v124_v15, 0 }
  0x8f   :  { %v135_v17 = vadd.f32 %v553_v14, %v129_v16 }
  0x91   :  { %559 = vtanh.f32 %v135_v17 }
  0x92   :  { %v120_v19 = vpop.f32.mrf.mxu1 }
  0x93   :  { %v130_v20 = vadd.f32 %v126_v18, %v120_v19 }
  0x95   :  { %v136_v22 = vadd.f32 %v553_v14, %v130_v20 }
  0x97   :  { %v560_v23 = vpop.eup %559  ;;  %561 = vtanh.f32 %v136_v22 }
  0x98   :  { %v143_v24 = vmul.f32 %v560_v23, %v554_v21 }
  0x9a   :  { %v145_v25 = vsel %vm66_vm0, %v143_v24, 0.0  ;;  %v269_v24 = vld [vmem:[%s890_s8 + $0x18] sm:$0xff] }
  0x9b   :  { %146 = vadd.xlane.f32.xlu0 %v145_v25  ;;  %284 = vmatpush.msra.mxu2 %v269_v24  ;;  %v268_v25 = vld [vmem:[%s890_s8 + $0x10] sm:$0xff] }
  0x9d   :  { %v562_v26 = vpop.eup %561  ;;  %285 = vmatpush.msra.mxu2 %v268_v25 }
  0x9e   :  { %v144_v27 = vmul.f32 %v562_v26, %v554_v21  ;;  %v267_v26 = vld [vmem:[%s890_s8 + $0x8] sm:$0xff] }
  0x9f   :  { %286 = vmatpush.msra.mxu2 %v267_v26 }
  0xa0   :  { %v148_v28 = vsel %vm66_vm0, %v144_v27, 0.0  ;;  %v266_v27 = vld [vmem:[%s890_s8] sm:$0xff] }
  0xa1   :  { %287 = vmatpush.msra.mxu2 %v266_v27 }
  0xa3   :  { %149 = vadd.xlane.f32.xlu0 %v148_v28  ;;  %v313_v28 = vpop.f32.mrf.mxu3 }
  0xab   :  { %v349_v30 = vpop.f32.mrf.mxu3 }
 0x10e   :  { %v147_v29 = vpop.xlane.xlu0 %146 }
 0x10f   :  { %v155_v33 = vperm.slane %v147_v29, %v759_v31 }
 0x116   :  { %v150_v32 = vpop.xlane.xlu0 %149 }
 0x117   :  { %v156_v34 = vperm.slane %v150_v32, %v759_v31 }
 0x119   :  { %v158_v35 = vsel %vm157_vm1, %v156_v34, %v155_v33 }
 0x11a   :  { %v161_v36 = vsel %vm160_vm2, %v158_v35, -inf }
 0x11b   :  { %162 = vmax.xlane.f32.xlu1 %v161_v36 }
 0x18e   :  { %v163_v38 = vpop.xlane.xlu1 %162 }
 0x18f   :  { %v165_v39 = vperm.slane %v163_v38, 0  ;;  %v166_v40 = vperm.slane %v163_v38, 1 }
 0x191   :  { %v169_v41 = vsub.f32 %v147_v29, %v165_v39  ;;  %v170_v42 = vsub.f32 %v150_v32, %v166_v40  ;;  %v555_v29 = vld [vmem:[%s893_s11] ss:$0 sm:$0xff] }
 0x192   :  { %v350_v32 = vadd.f32 %v555_v29, %v349_v30 }
 0x193   :  { %v171_v43 = vmul.f32 1.442695, %v169_v41  ;;  %v173_v44 = vmul.f32 1.442695, %v170_v42 }
 0x195   :  { %563 = vpow2.f32 %v171_v43 }
 0x196   :  { %565 = vpow2.f32 %v173_v44 }
 0x19b   :  { %v564_v45 = vpop.eup %563 }
 0x19c   :  { %v566_v46 = vpop.eup %565  ;;  %178 = vperm.xlu1 %550, %v564_v45  }
 0x19d   :  { %181 = vperm.xlu2 %551, %v566_v46  }
 0x1f7   :  { %v182_v47 = vpop.permute.xlu2 %181 }
 0x1f8   :  { %v184_v49 = vperm.slane %v182_v47, %v759_v31 }
 0x20e   :  { %v179_v48 = vpop.permute.xlu1 %178 }
 0x20f   :  { %v183_v50 = vperm.slane %v179_v48, %v759_v31 }
 0x211   :  { %v185_v51 = vsel %vm157_vm1, %v184_v49, %v183_v50 }
 0x212   :  { %v187_v52 = vsel %vm160_vm2, %v185_v51, 0.0 }
 0x213   :  { %188 = vadd.xlane.f32.xlu2 %v187_v52  ;;  %v556_v52 = vld [vmem:[%s892_s10] ss:$0 sm:$0xff]  ;;  %s612_s10 = smov 96  }
 0x286   :  { %v189_v60 = vpop.xlane.xlu2 %188 }
 0x287   :  { %v191_v62 = vperm.slane %v189_v60, 0  ;;  %v192_v63 = vperm.slane %v189_v60, 1 }
 0x289   :  { %567 = vrcp.f32 %v191_v62  ;;  %v206_v6 = vand.u32 2147483648, %v191_v62  ;;  %v221_v7 = vand.u32 2147483648, %v192_v63  ;;  %v204_v11 = vand.u32 2147483647, %v191_v62 }
 0x28a   :  { %569 = vrcp.f32 %v192_v63  ;;  %v219_v13 = vand.u32 2147483647, %v192_v63  ;;  %vm200_vm6 = vweird.f32 %v191_v62  ;;  %vm215_vm7 = vweird.f32 %v192_v63 }
 0x28b   :  { %v207_v16 = vor.u32 1.1754944e-38, %v206_v6  ;;  %v222_v17 = vor.u32 1.1754944e-38, %v221_v7  ;;  %vm205_vm10 = vcmp.eq.f32.partialorder %v204_v11, 8.507059e+37 }
 0x28c   :  { %vm220_vm11 = vcmp.eq.f32.partialorder %v219_v13, 8.507059e+37  ;;  %v430_v13 = vld [vmem:[%s895_s13 + $0x18] sm:$0xff] }
 0x28d   :  { %450 = vmatpush.msrb.mxu2 %v430_v13 }
 0x28f   :  { %v568_v0 = vpop.eup %567 }
 0x290   :  { %v570_v1 = vpop.eup %569  ;;  %v196_v2 = vmul.f32 %v568_v0, %v191_v62  ;;  %vm201_vm4 = vweird.f32 %v568_v0 }
 0x291   :  { %v211_v3 = vmul.f32 %v570_v1, %v192_v63  ;;  %vm216_vm5 = vweird.f32 %v570_v1  ;;  %vm202_vm8 = vmor %vm200_vm6, %vm201_vm4 }
 0x292   :  { %v197_v4 = vsub.f32 1.0, %v196_v2  ;;  %vm217_vm9 = vmor %vm215_vm7, %vm216_vm5 }
 0x293   :  { %v212_v5 = vsub.f32 1.0, %v211_v3 }
 0x294   :  { %v198_v8 = vmul.f32 %v568_v0, %v197_v4 }
 0x295   :  { %v213_v12 = vmul.f32 %v570_v1, %v212_v5 }
 0x296   :  { %v199_v14 = vadd.f32 %v568_v0, %v198_v8 }
 0x297   :  { %v214_v15 = vadd.f32 %v570_v1, %v213_v12 }
 0x298   :  { %v203_v18 = vsel %vm202_vm8, %v568_v0, %v199_v14  ;;  %v429_v14 = vld [vmem:[%s895_s13 + $0x10] sm:$0xff] }
 0x299   :  { %v218_v19 = vsel %vm217_vm9, %v570_v1, %v214_v15  ;;  %v208_v20 = vsel %vm205_vm10, %v207_v16, %v203_v18  ;;  %v397_v15 = vld [vmem:[%s894_s12 + $0x18] sm:$0xff]  ;;  %v428_v16 = vld [vmem:[%s895_s13 + $0x8] sm:$0xff]  ;;  %451 = vmatpush.msrb.mxu2 %v429_v14 }
 0x29a   :  { %v223_v21 = vsel %vm220_vm11, %v222_v17, %v218_v19  ;;  %v209_v22 = vmul.f32 %v564_v45, %v208_v20  ;;  %419 = vmatpush.msrb.mxu0 %v397_v15  ;;  %v396_v17 = vld [vmem:[%s894_s12 + $0x10] sm:$0xff]  ;;  %v395_v18 = vld [vmem:[%s894_s12 + $0x8] sm:$0xff]  ;;  %v427_v19 = vld [vmem:[%s895_s13] sm:$0xff] }
 0x29b   :  { %v224_v23 = vmul.f32 %v566_v46, %v223_v21  ;;  %452 = vmatpush.msrb.mxu2 %v428_v16  ;;  %v536_v20 = vld [vmem:[%s906_s30 + $0x2] sm:$0x3] }
 0x29c   :  { %228 = vperm.xlu0 %552, %v209_v22   ;;  %420 = vmatpush.msrb.mxu0 %v396_v17  ;;  %v394_v21 = vld [vmem:[%s894_s12] sm:$0xff] }
 0x29d   :  { %231 = vperm.xlu1 %550, %v224_v23   ;;  %453 = vmatpush.msrb.mxu2 %v427_v19 }
 0x29e   :  { %421 = vmatpush.msrb.mxu0 %v395_v18 }
 0x2a0   :  { %422 = vmatpush.msrb.mxu0 %v394_v21 }
 0x2a4   :  { %389 = vrot.lane.b32.xlu0 %v262_v61, %s610_s9 }
 0x2a5   :  { %373 = vrot.lane.b32.xlu1 %v350_v32, %s611_s29 }
 0x30e   :  { %v229_v33 = vpop.permute.xlu0 %228 }
 0x30f   :  { %v232_v34 = vpop.permute.xlu1 %231  ;;  %v233_v35 = vperm.slane %v229_v33, %v759_v31  ;;  %v240_v36 = vmul.f32 %v229_v33, %v739_v9  ;;  %v558_v33 = vld [vmem:[%s896_s14] ss:$0 sm:$0xff]  ;;  %s613_s14 = smov [#allocation2]  }
 0x310   :  { %v234_v37 = vperm.slane %v232_v34, %v759_v31  ;;  %v241_v38 = vmul.f32 %v232_v34, %v747_v10 }
 0x311   :  { %v242_v39 = vsel %vm66_vm0, %v240_v36, 0.0 }
 0x312   :  { %v249_v40 = vsel %vm66_vm0, %v241_v38, 0.0  ;;  %v243_v41 = vrot.slane %v242_v39, 4  ;;  %v235_v42 = vsel %vm157_vm1, %v234_v37, %v233_v35 }
 0x313   :  { %v250_v43 = vrot.slane %v249_v40, 4  ;;  %237 = vst.msk [vmem:[#allocation2] sm:$0x3] %vm160_vm2, %v235_v42 }
 0x314   :  { %v244_v44 = vadd.f32 %v243_v41, %v242_v39 }
 0x315   :  { %v251_v45 = vadd.f32 %v250_v43, %v249_v40 }
 0x316   :  { %v245_v9 = vrot.slane %v244_v44, 2  ;;  %v390_v22 = vpop.permute.xlu0 %389 }
 0x317   :  { %v252_v46 = vrot.slane %v251_v45, 2  ;;  %v374_v4 = vpop.permute.xlu1 %373 }
 0x318   :  { %v246_v47 = vadd.f32 %v245_v9, %v244_v44 }
 0x319   :  { %v253_v48 = vadd.f32 %v252_v46, %v251_v45 }
 0x31a   :  { %v247_v49 = vrot.slane %v246_v47, 1 }
 0x31b   :  { %v254_v31 = vrot.slane %v253_v48, 1 }
 0x31c   :  { %v248_v50 = vadd.f32 %v247_v49, %v246_v47 }
 0x31d   :  { %v255_v10 = vadd.f32 %v254_v31, %v253_v48 }
 0x31f   :  { %v258_v51 = vsel %vm157_vm1, %v255_v10, %v248_v50 }
 0x320   :  { %261 = vst.msk [vmem:[%s899_s17] sm:$0x3] %vm260_vm12, %v258_v51  ;;  %537 = vmatmul.msk.f32.vlgmr.msra.gmra.mxu2 %vm66_vm0, %v258_v51 }
 0x328   :  { %542 = vmatmul.msk.f32.vlgmr.msrb.gmra.mxu2 %vm66_vm0, %v536_v20 }
 0x3a3   :  { %v289_v53 = vpop.f32.mrf.mxu2 }
 0x3a4   :  { %v314_v54 = vadd.f32 %v313_v28, %v289_v53  ;;  %v557_v28 = vld [vmem:[%s897_s15] ss:$0 sm:$0xff]  ;;  %s517_s15 = sshll.u32 %s613_s14, 4  ;;  %s518_s15 = int_to_ptr.vmem [resolvable:$true] %s517_s15 }
 0x3a5   :  { %522 = dma.vmem_to_hbm [thread:$0]  %s518_s15, 32, %s520_s3, [#allocation3]  }
 0x3a6   :  { %v320_v55 = vadd.f32 %v556_v52, %v314_v54 }
 0x3a8   :  { %v352_v56 = vadd.f32 %v350_v32, %v320_v55 }
 0x3aa   :  { %v540_v57 = vmul.f32 -1.442695, %v352_v56 }
 0x3ab   :  { %v455_v29 = vpop.f32.mrf.mxu2 }
 0x3ac   :  { %571 = vpow2.f32 %v540_v57  ;;  %v456_v30 = vadd.f32 %v557_v28, %v455_v29 }
 0x3ae   :  { %479 = vrot.lane.b32.xlu0 %v456_v30, %s611_s29 }
 0x3b2   :  { %v572_v58 = vpop.eup %571 }
 0x3b3   :  { %v356_v59 = vadd.f32 1.0, %v572_v58 }
 0x3b5   :  { %573 = vrcp.f32 %v356_v59  ;;  %v368_v63 = vand.u32 2147483648, %v356_v59  ;;  %v366_v1 = vand.u32 2147483647, %v356_v59  ;;  %vm362_vm14 = vweird.f32 %v356_v59 }
 0x3b7   :  { %v369_v3 = vor.u32 1.1754944e-38, %v368_v63  ;;  %vm367_vm1 = vcmp.eq.f32.partialorder %v366_v1, 8.507059e+37 }
 0x3bb   :  { %v574_v60 = vpop.eup %573 }
 0x3bc   :  { %v358_v61 = vmul.f32 %v574_v60, %v356_v59  ;;  %vm363_vm13 = vweird.f32 %v574_v60 }
 0x3bd   :  { %vm364_vm15 = vmor %vm362_vm14, %vm363_vm13 }
 0x3be   :  { %v359_v62 = vsub.f32 1.0, %v358_v61 }
 0x3c0   :  { %v360_v0 = vmul.f32 %v574_v60, %v359_v62 }
 0x3c2   :  { %v361_v2 = vadd.f32 %v574_v60, %v360_v0 }
 0x3c4   :  { %v365_v5 = vsel %vm364_vm15, %v574_v60, %v361_v2 }
 0x3c5   :  { %v370_v6 = vsel %vm367_vm1, %v369_v3, %v365_v5 }
 0x3c6   :  { %v376_v7 = vmul.f32 %v374_v4, %v370_v6  ;;  %v383_v23 = vsub.f32 1.0, %v370_v6  ;;  %v392_v25 = vmul.f32 %v390_v22, %v370_v6 }
 0x3c8   :  { %378 = vrot.lane.b32.xlu1 %v376_v7, %s611_s29 }
 0x420   :  { %v480_v46 = vpop.permute.xlu0 %479 }
 0x43a   :  { %v379_v8 = vpop.permute.xlu1 %378 }
 0x43b   :  { %v381_v11 = vadd.f32 %v379_v8, %v320_v55 }
 0x43d   :  { %575 = vtanh.f32 %v381_v11 }
 0x443   :  { %v576_v12 = vpop.eup %575 }
 0x444   :  { %385 = vrot.lane.b32.xlu2 %v576_v12, %s612_s10 }
 0x49e   :  { %v386_v24 = vpop.permute.xlu2 %385 }
 0x49f   :  { %v388_v26 = vmul.f32 %v386_v24, %v383_v23 }
 0x4a1   :  { %v393_v27 = vadd.f32 %v392_v25, %v388_v26 }
 0x4a3   :  { %403 = vrot.lane.b32.xlu1 %v393_v27, %s612_s10 }
 0x515   :  { %v404_v32 = vpop.permute.xlu1 %403 }
 0x516   :  { %501 = vst.msk [vmem:[%s898_s16] sm:$0x3] %vm260_vm12, %v404_v32  ;;  %541 = vmatmul.msk.f32.vlgmr.msrb.gmra.mxu0 %vm66_vm0, %v404_v32 }
 0x593   :  { %v424_v34 = vpop.f32.mrf.mxu0 }
 0x594   :  { %v425_v35 = vadd.f32 %v558_v33, %v424_v34 }
 0x596   :  { %v458_v36 = vadd.f32 %v456_v30, %v425_v35 }
 0x598   :  { %v543_v37 = vmul.f32 -1.442695, %v458_v36 }
 0x59a   :  { %577 = vpow2.f32 %v543_v37 }
 0x5a0   :  { %v578_v38 = vpop.eup %577 }
 0x5a1   :  { %v462_v39 = vadd.f32 1.0, %v578_v38 }
 0x5a3   :  { %579 = vrcp.f32 %v462_v39  ;;  %v474_v43 = vand.u32 2147483648, %v462_v39  ;;  %v472_v45 = vand.u32 2147483647, %v462_v39  ;;  %vm468_vm0 = vweird.f32 %v462_v39 }
 0x5a5   :  { %v475_v47 = vor.u32 1.1754944e-38, %v474_v43  ;;  %vm473_vm4 = vcmp.eq.f32.partialorder %v472_v45, 8.507059e+37 }
 0x5a9   :  { %v580_v40 = vpop.eup %579 }
 0x5aa   :  { %v464_v41 = vmul.f32 %v580_v40, %v462_v39  ;;  %vm469_vm2 = vweird.f32 %v580_v40 }
 0x5ab   :  { %vm470_vm3 = vmor %vm468_vm0, %vm469_vm2 }
 0x5ac   :  { %v465_v42 = vsub.f32 1.0, %v464_v41 }
 0x5ae   :  { %v466_v44 = vmul.f32 %v580_v40, %v465_v42 }
 0x5b0   :  { %v467_v9 = vadd.f32 %v580_v40, %v466_v44 }
 0x5b2   :  { %v471_v48 = vsel %vm470_vm3, %v580_v40, %v467_v9 }
 0x5b3   :  { %v476_v49 = vsel %vm473_vm4, %v475_v47, %v471_v48 }
 0x5b4   :  { %v482_v31 = vmul.f32 %v480_v46, %v476_v49  ;;  %v489_v53 = vsub.f32 1.0, %v476_v49 }
 0x5b6   :  { %484 = vrot.lane.b32.xlu1 %v482_v31, %s611_s29 }
 0x5be   :  { %495 = vrot.lane.b32.xlu1 %v536_v20, %s610_s9 }
 0x628   :  { %v485_v50 = vpop.permute.xlu1 %484 }
 0x629   :  { %v487_v10 = vadd.f32 %v485_v50, %v425_v35 }
 0x62b   :  { %581 = vtanh.f32 %v487_v10 }
 0x630   :  { %v496_v52 = vpop.permute.xlu1 %495 }
 0x631   :  { %v582_v51 = vpop.eup %581  ;;  %v498_v55 = vmul.f32 %v496_v52, %v476_v49 }
 0x632   :  { %491 = vrot.lane.b32.xlu0 %v582_v51, %s612_s10 }
 0x6a4   :  { %v492_v54 = vpop.permute.xlu0 %491 }
 0x6a5   :  { %v494_v56 = vmul.f32 %v492_v54, %v489_v53 }
 0x6a7   :  { %v499_v57 = vadd.f32 %v498_v55, %v494_v56 }
 0x6a9   :  { %503 = vrot.lane.b32.xlu2 %v499_v57, %s612_s10 }
 0x703   :  { %v504_v58 = vpop.permute.xlu2 %503 }
 0x704   :  { %544 = vst.msk [vmem:[%s898_s16 + $0x2] sm:$0x3] %vm260_vm12, %v504_v58 }
 0x705   :  { %607 = dma.done.wait [#allocation3], 32  }
 0x706   :  { %608 = vsyncadd [#allocation3], 4294967264 }
 0x707   :  { %531 = vsyncpa [#allocation3], 1 }

</bundles_post_ra>
